<compile_context>
chip_gen: v5e
topology: v5e:2x2
jax: 0.10.0
libtpu: 0.0.40
codegen_flags: <defaults>
</compile_context>

<pallas_src>
import jax
import jax.numpy as jnp
from jax.experimental import pallas as pl
from jax.experimental.pallas import tpu as pltpu


def rnn_kernel(x_ref, whT_ref, wxT_ref, bhx_ref, woT_ref, bo_ref, o_ref):
    """Single-invocation kernel (no grid); everything resident in VMEM.

    Refs:
      x_ref   : (B, T*d_in)        batch-major inputs, time in 128-free lane chunks
      whT_ref : (d_hp, d_hp)       Wh.weight.T zero-padded to 128 lanes
      wxT_ref : (d_in, d_hp)       Wx.weight.T zero-padded
      bhx_ref : (1, d_hp)          bh + bx (folded), zero-padded
      woT_ref : (d_hp, d_op)       Wo.weight.T zero-padded
      bo_ref  : (1, d_op)          bo zero-padded
      o_ref   : (B, (T+1)*d_op)    lane-dense outputs incl. torch's zero block
    """
    B = x_ref.shape[0]
    d_in = wxT_ref.shape[0]
    d_hp = whT_ref.shape[0]
    d_op = bo_ref.shape[1]
    T = x_ref.shape[1] // d_in

    # 1) Gather time-major input rows (static lane slices + one sublane concat,
    #    off the serial chain), then ONE hoisted lane-dense input projection
    #    with bh + bx folded into a single bias add.
    x_tm = jnp.concatenate(
        [x_ref[:, t * d_in:(t + 1) * d_in] for t in range(T)], axis=0)   # (T*B, d_in)
    s_x = (jnp.dot(x_tm, wxT_ref[...], preferred_element_type=jnp.float32)
           + bhx_ref[...])                                               # (T*B, d_hp)

    # 2) Serial recurrence: only  h @ WhT -> (+ s_x[t]) -> tanh  remains on the
    #    sequential dependency chain.  WhT loaded once (loop-invariant).
    whT = whT_ref[...]
    h = jnp.zeros((B, d_hp), jnp.float32)
    pre = []
    for t in range(T):                       # static T -> full unroll
        if t == 0:
            s_t = s_x[0:B, :]                # h0 == 0  =>  h0 @ WhT == 0 exactly
        else:
            s_t = (jnp.dot(h, whT, preferred_element_type=jnp.float32)
                   + s_x[t * B:(t + 1) * B, :])
        pre.append(s_t)                      # keep pre-activation for Wo
        h = jnp.tanh(s_t)

    # 3) Hoisted output projection: one batched matmul.
    s_all = jnp.concatenate(pre, axis=0)                                 # (T*B, d_hp)
    o_all = (jnp.dot(s_all, woT_ref[...], preferred_element_type=jnp.float32)
             + bo_ref[...])                                              # (T*B, d_op)

    # 4) Lane-dense, lane-tile-aligned stores; torch's initial zero block is
    #    written here so the wrapper needs no concat.
    o_ref[:, 0:d_op] = jnp.zeros((B, d_op), jnp.float32)
    for t in range(T):
        o_ref[:, (t + 1) * d_op:(t + 2) * d_op] = o_all[t * B:(t + 1) * B, :]


def _round_up(x, m):
    return ((x + m - 1) // m) * m


@jax.jit
def rnn_forward(seq, params):
    """seq: (B, T, d_in) float32.  Returns (B, (T+1)*d_out) float32."""
    whT, bh, wxT, bx, woT, bo = params
    B, T, d_in = seq.shape
    d_h = whT.shape[0]
    d_out = woT.shape[1]

    d_hp = _round_up(d_h, 128)      # lane-dense hidden width
    d_op = _round_up(d_out, 128)    # lane-dense output width

    # Zero-pad weights/biases to lane-dense shapes.  Padded lanes of bhx/bo and
    # padded rows/cols of the weights are exactly 0, so padded hidden lanes stay
    # 0 through tanh and contribute nothing to the outputs.
    f32 = jnp.float32
    whT_p = jnp.zeros((d_hp, d_hp), f32).at[:d_h, :d_h].set(whT.astype(f32))
    wxT_p = jnp.zeros((d_in, d_hp), f32).at[:, :d_h].set(wxT.astype(f32))
    bhx_p = jnp.zeros((1, d_hp), f32).at[0, :d_h].set((bh + bx).astype(f32))
    woT_p = jnp.zeros((d_hp, d_op), f32).at[:d_h, :d_out].set(woT.astype(f32))
    bo_p = jnp.zeros((1, d_op), f32).at[0, :d_out].set(bo.astype(f32))

    # Free contiguous reshape — no transpose / pad / concat on the activations.
    x2d = seq.astype(f32).reshape(B, T * d_in)

    vmem = pl.BlockSpec(memory_space=pltpu.MemorySpace.VMEM)
    vmem_bytes = 4 * (x2d.size + whT_p.size + wxT_p.size + bhx_p.size
                      + woT_p.size + bo_p.size
                      + B * (T + 1) * d_op + T * B * d_hp)
    vmem_limit = int(min(64 * 1024 * 1024, max(4 * 1024 * 1024, 2 * vmem_bytes)))

    o = pl.pallas_call(
        rnn_kernel,
        out_shape=jax.ShapeDtypeStruct((B, (T + 1) * d_op), f32),
        in_specs=[vmem] * 6,
        out_specs=vmem,
        compiler_params=pltpu.CompilerParams(vmem_limit_bytes=vmem_limit),
    )(x2d, whT_p, wxT_p, bhx_p, woT_p, bo_p)

    # Tiny post-processing: drop the zero-padded lanes, flatten time.
    return o.reshape(B, T + 1, d_op)[:, :, :d_out].reshape(B, (T + 1) * d_out)


def rnn_reference(seq, params):
    """Pure-JAX reference mirroring the PyTorch loop."""
    whT, bh, wxT, bx, woT, bo = params
    B, T, _ = seq.shape
    d_h = whT.shape[0]
    d_out = woT.shape[1]
    ht = jnp.zeros((B, d_h), jnp.float32)
    outs = [jnp.zeros((B, d_out), jnp.float32)]
    for t in range(T):
        s = ht @ whT + bh + seq[:, t] @ wxT + bx
        ht = jnp.tanh(s)
        outs.append(s @ woT + bo)
    return jnp.concatenate(outs, axis=1)


def init_params(key, d_in_x, d_h, d_out):
    """torch.nn.Linear-style init (uniform +-1/sqrt(fan_in)).
    Weights stored pre-transposed as (fan_in, fan_out)."""
    ks = jax.random.split(key, 6)

    def u(k, shape, fan_in):
        b = 1.0 / jnp.sqrt(fan_in)
        return jax.random.uniform(k, shape, jnp.float32, -b, b)

    whT = u(ks[0], (d_h, d_h), d_h)
    bh = u(ks[1], (d_h,), d_h)
    wxT = u(ks[2], (d_in_x, d_h), d_in_x)
    bx = u(ks[3], (d_h,), d_in_x)
    woT = u(ks[4], (d_h, d_out), d_h)
    bo = u(ks[5], (d_out,), d_h)
    return (whT, bh, wxT, bx, woT, bo)


if __name__ == "__main__":
    B, T, d_in_x, d_h, d_out = 2, 8, 4, 32, 3

    key = jax.random.PRNGKey(0)
    k_seq, k_par = jax.random.split(key)
    seq = jax.random.normal(k_seq, (B, T, d_in_x), jnp.float32)
    params = init_params(k_par, d_in_x, d_h, d_out)

    out = jax.block_until_ready(rnn_forward(seq, params))
    ref = rnn_reference(seq, params)

    assert out.shape == (B, (T + 1) * d_out), out.shape
    assert jnp.allclose(out, ref, atol=1e-5, rtol=1e-5), \
        float(jnp.max(jnp.abs(out - ref)))
    print("KERNEL_OK")
</pallas_src>

<mosaic_0001>
module attributes {stable_mosaic.version = 11 : i64} {
  func.func @rnn_kernel(%arg0: memref<2x32xf32, #tpu.memory_space<vmem>>, %arg1: memref<128x128xf32, #tpu.memory_space<vmem>>, %arg2: memref<4x128xf32, #tpu.memory_space<vmem>>, %arg3: memref<1x128xf32, #tpu.memory_space<vmem>>, %arg4: memref<128x128xf32, #tpu.memory_space<vmem>>, %arg5: memref<1x128xf32, #tpu.memory_space<vmem>>, %arg6: memref<2x1152xf32, #tpu.memory_space<vmem>>) attributes {dimension_semantics = [], scalar_prefetch = 0 : i64, scratch_operands = 0 : i64, tpu.core_type = #tpu.core_type<tc>} {
    %c0 = arith.constant 0 : index
    %c0_0 = arith.constant 0 : index
    %0 = vector.load %arg0[%c0, %c0_0] : memref<2x32xf32, #tpu.memory_space<vmem>>, vector<2x4xf32>
    %c0_1 = arith.constant 0 : index
    %c4 = arith.constant 4 : index
    %1 = vector.load %arg0[%c0_1, %c4] : memref<2x32xf32, #tpu.memory_space<vmem>>, vector<2x4xf32>
    %c0_2 = arith.constant 0 : index
    %c8 = arith.constant 8 : index
    %2 = vector.load %arg0[%c0_2, %c8] : memref<2x32xf32, #tpu.memory_space<vmem>>, vector<2x4xf32>
    %c0_3 = arith.constant 0 : index
    %c12 = arith.constant 12 : index
    %3 = vector.load %arg0[%c0_3, %c12] : memref<2x32xf32, #tpu.memory_space<vmem>>, vector<2x4xf32>
    %c0_4 = arith.constant 0 : index
    %c16 = arith.constant 16 : index
    %4 = vector.load %arg0[%c0_4, %c16] : memref<2x32xf32, #tpu.memory_space<vmem>>, vector<2x4xf32>
    %c0_5 = arith.constant 0 : index
    %c20 = arith.constant 20 : index
    %5 = vector.load %arg0[%c0_5, %c20] : memref<2x32xf32, #tpu.memory_space<vmem>>, vector<2x4xf32>
    %c0_6 = arith.constant 0 : index
    %c24 = arith.constant 24 : index
    %6 = vector.load %arg0[%c0_6, %c24] : memref<2x32xf32, #tpu.memory_space<vmem>>, vector<2x4xf32>
    %c0_7 = arith.constant 0 : index
    %c28 = arith.constant 28 : index
    %7 = vector.load %arg0[%c0_7, %c28] : memref<2x32xf32, #tpu.memory_space<vmem>>, vector<2x4xf32>
    %8 = tpu.concatenate %0, %1, %2, %3, %4, %5, %6, %7 in 0 : vector<2x4xf32>, vector<2x4xf32>, vector<2x4xf32>, vector<2x4xf32>, vector<2x4xf32>, vector<2x4xf32>, vector<2x4xf32>, vector<2x4xf32> -> vector<16x4xf32>
    %c0_8 = arith.constant 0 : index
    %c0_9 = arith.constant 0 : index
    %9 = vector.load %arg2[%c0_8, %c0_9] : memref<4x128xf32, #tpu.memory_space<vmem>>, vector<4x128xf32>
    %cst = arith.constant dense<0.000000e+00> : vector<16x128xf32>
    %10 = tpu.matmul %8, %9, %cst {dimension_numbers = #tpu.dot_dimension_numbers<[1], [0], [0], [1], [0, 0, 1, 1], [], []>} : vector<16x4xf32>, vector<4x128xf32>, vector<16x128xf32> -> vector<16x128xf32>
    %c0_10 = arith.constant 0 : index
    %c0_11 = arith.constant 0 : index
    %11 = vector.load %arg3[%c0_10, %c0_11] : memref<1x128xf32, #tpu.memory_space<vmem>>, vector<1x128xf32>
    %12 = vector.broadcast %11 : vector<1x128xf32> to vector<16x128xf32>
    %13 = arith.addf %10, %12 : vector<16x128xf32>
    %c0_12 = arith.constant 0 : index
    %c0_13 = arith.constant 0 : index
    %14 = vector.load %arg1[%c0_12, %c0_13] : memref<128x128xf32, #tpu.memory_space<vmem>>, vector<128x128xf32>
    %15 = vector.extract_strided_slice %13 {offsets = [0, 0], sizes = [2, 128], strides = [1, 1]} : vector<16x128xf32> to vector<2x128xf32>
    %16 = math.tanh %15 : vector<2x128xf32>
    %cst_14 = arith.constant dense<0.000000e+00> : vector<2x128xf32>
    %17 = tpu.matmul %16, %14, %cst_14 {dimension_numbers = #tpu.dot_dimension_numbers<[1], [0], [0], [1], [0, 0, 1, 1], [], []>} : vector<2x128xf32>, vector<128x128xf32>, vector<2x128xf32> -> vector<2x128xf32>
    %18 = vector.extract_strided_slice %13 {offsets = [2, 0], sizes = [2, 128], strides = [1, 1]} : vector<16x128xf32> to vector<2x128xf32>
    %19 = arith.addf %17, %18 : vector<2x128xf32>
    %20 = math.tanh %19 : vector<2x128xf32>
    %cst_15 = arith.constant dense<0.000000e+00> : vector<2x128xf32>
    %21 = tpu.matmul %20, %14, %cst_15 {dimension_numbers = #tpu.dot_dimension_numbers<[1], [0], [0], [1], [0, 0, 1, 1], [], []>} : vector<2x128xf32>, vector<128x128xf32>, vector<2x128xf32> -> vector<2x128xf32>
    %22 = vector.extract_strided_slice %13 {offsets = [4, 0], sizes = [2, 128], strides = [1, 1]} : vector<16x128xf32> to vector<2x128xf32>
    %23 = arith.addf %21, %22 : vector<2x128xf32>
    %24 = math.tanh %23 : vector<2x128xf32>
    %cst_16 = arith.constant dense<0.000000e+00> : vector<2x128xf32>
    %25 = tpu.matmul %24, %14, %cst_16 {dimension_numbers = #tpu.dot_dimension_numbers<[1], [0], [0], [1], [0, 0, 1, 1], [], []>} : vector<2x128xf32>, vector<128x128xf32>, vector<2x128xf32> -> vector<2x128xf32>
    %26 = vector.extract_strided_slice %13 {offsets = [6, 0], sizes = [2, 128], strides = [1, 1]} : vector<16x128xf32> to vector<2x128xf32>
    %27 = arith.addf %25, %26 : vector<2x128xf32>
    %28 = math.tanh %27 : vector<2x128xf32>
    %cst_17 = arith.constant dense<0.000000e+00> : vector<2x128xf32>
    %29 = tpu.matmul %28, %14, %cst_17 {dimension_numbers = #tpu.dot_dimension_numbers<[1], [0], [0], [1], [0, 0, 1, 1], [], []>} : vector<2x128xf32>, vector<128x128xf32>, vector<2x128xf32> -> vector<2x128xf32>
    %30 = vector.extract_strided_slice %13 {offsets = [8, 0], sizes = [2, 128], strides = [1, 1]} : vector<16x128xf32> to vector<2x128xf32>
    %31 = arith.addf %29, %30 : vector<2x128xf32>
    %32 = math.tanh %31 : vector<2x128xf32>
    %cst_18 = arith.constant dense<0.000000e+00> : vector<2x128xf32>
    %33 = tpu.matmul %32, %14, %cst_18 {dimension_numbers = #tpu.dot_dimension_numbers<[1], [0], [0], [1], [0, 0, 1, 1], [], []>} : vector<2x128xf32>, vector<128x128xf32>, vector<2x128xf32> -> vector<2x128xf32>
    %34 = vector.extract_strided_slice %13 {offsets = [10, 0], sizes = [2, 128], strides = [1, 1]} : vector<16x128xf32> to vector<2x128xf32>
    %35 = arith.addf %33, %34 : vector<2x128xf32>
    %36 = math.tanh %35 : vector<2x128xf32>
    %cst_19 = arith.constant dense<0.000000e+00> : vector<2x128xf32>
    %37 = tpu.matmul %36, %14, %cst_19 {dimension_numbers = #tpu.dot_dimension_numbers<[1], [0], [0], [1], [0, 0, 1, 1], [], []>} : vector<2x128xf32>, vector<128x128xf32>, vector<2x128xf32> -> vector<2x128xf32>
    %38 = vector.extract_strided_slice %13 {offsets = [12, 0], sizes = [2, 128], strides = [1, 1]} : vector<16x128xf32> to vector<2x128xf32>
    %39 = arith.addf %37, %38 : vector<2x128xf32>
    %40 = math.tanh %39 : vector<2x128xf32>
    %cst_20 = arith.constant dense<0.000000e+00> : vector<2x128xf32>
    %41 = tpu.matmul %40, %14, %cst_20 {dimension_numbers = #tpu.dot_dimension_numbers<[1], [0], [0], [1], [0, 0, 1, 1], [], []>} : vector<2x128xf32>, vector<128x128xf32>, vector<2x128xf32> -> vector<2x128xf32>
    %42 = vector.extract_strided_slice %13 {offsets = [14, 0], sizes = [2, 128], strides = [1, 1]} : vector<16x128xf32> to vector<2x128xf32>
    %43 = arith.addf %41, %42 : vector<2x128xf32>
    %44 = tpu.concatenate %15, %19, %23, %27, %31, %35, %39, %43 in 0 : vector<2x128xf32>, vector<2x128xf32>, vector<2x128xf32>, vector<2x128xf32>, vector<2x128xf32>, vector<2x128xf32>, vector<2x128xf32>, vector<2x128xf32> -> vector<16x128xf32>
    %c0_21 = arith.constant 0 : index
    %c0_22 = arith.constant 0 : index
    %45 = vector.load %arg4[%c0_21, %c0_22] : memref<128x128xf32, #tpu.memory_space<vmem>>, vector<128x128xf32>
    %cst_23 = arith.constant dense<0.000000e+00> : vector<16x128xf32>
    %46 = tpu.matmul %44, %45, %cst_23 {dimension_numbers = #tpu.dot_dimension_numbers<[1], [0], [0], [1], [0, 0, 1, 1], [], []>} : vector<16x128xf32>, vector<128x128xf32>, vector<16x128xf32> -> vector<16x128xf32>
    %c0_24 = arith.constant 0 : index
    %c0_25 = arith.constant 0 : index
    %47 = vector.load %arg5[%c0_24, %c0_25] : memref<1x128xf32, #tpu.memory_space<vmem>>, vector<1x128xf32>
    %48 = vector.broadcast %47 : vector<1x128xf32> to vector<16x128xf32>
    %49 = arith.addf %46, %48 : vector<16x128xf32>
    %cst_26 = arith.constant 0.000000e+00 : f32
    %50 = vector.broadcast %cst_26 : f32 to vector<2x128xf32>
    %c0_27 = arith.constant 0 : index
    %c0_28 = arith.constant 0 : index
    %51 = vector.load %arg6[%c0_27, %c0_28] : memref<2x1152xf32, #tpu.memory_space<vmem>>, vector<2x128xf32>
    tpu.vector_store %arg6[%c0_27, %c0_28], %50 {strides = array<i32>} : memref<2x1152xf32, #tpu.memory_space<vmem>>, vector<2x128xf32>,
    %52 = vector.extract_strided_slice %49 {offsets = [0, 0], sizes = [2, 128], strides = [1, 1]} : vector<16x128xf32> to vector<2x128xf32>
    %c0_29 = arith.constant 0 : index
    %c128 = arith.constant 128 : index
    %53 = vector.load %arg6[%c0_29, %c128] : memref<2x1152xf32, #tpu.memory_space<vmem>>, vector<2x128xf32>
    tpu.vector_store %arg6[%c0_29, %c128], %52 {strides = array<i32>} : memref<2x1152xf32, #tpu.memory_space<vmem>>, vector<2x128xf32>,
    %54 = vector.extract_strided_slice %49 {offsets = [2, 0], sizes = [2, 128], strides = [1, 1]} : vector<16x128xf32> to vector<2x128xf32>
    %c0_30 = arith.constant 0 : index
    %c256 = arith.constant 256 : index
    %55 = vector.load %arg6[%c0_30, %c256] : memref<2x1152xf32, #tpu.memory_space<vmem>>, vector<2x128xf32>
    tpu.vector_store %arg6[%c0_30, %c256], %54 {strides = array<i32>} : memref<2x1152xf32, #tpu.memory_space<vmem>>, vector<2x128xf32>,
    %56 = vector.extract_strided_slice %49 {offsets = [4, 0], sizes = [2, 128], strides = [1, 1]} : vector<16x128xf32> to vector<2x128xf32>
    %c0_31 = arith.constant 0 : index
    %c384 = arith.constant 384 : index
    %57 = vector.load %arg6[%c0_31, %c384] : memref<2x1152xf32, #tpu.memory_space<vmem>>, vector<2x128xf32>
    tpu.vector_store %arg6[%c0_31, %c384], %56 {strides = array<i32>} : memref<2x1152xf32, #tpu.memory_space<vmem>>, vector<2x128xf32>,
    %58 = vector.extract_strided_slice %49 {offsets = [6, 0], sizes = [2, 128], strides = [1, 1]} : vector<16x128xf32> to vector<2x128xf32>
    %c0_32 = arith.constant 0 : index
    %c512 = arith.constant 512 : index
    %59 = vector.load %arg6[%c0_32, %c512] : memref<2x1152xf32, #tpu.memory_space<vmem>>, vector<2x128xf32>
    tpu.vector_store %arg6[%c0_32, %c512], %58 {strides = array<i32>} : memref<2x1152xf32, #tpu.memory_space<vmem>>, vector<2x128xf32>,
    %60 = vector.extract_strided_slice %49 {offsets = [8, 0], sizes = [2, 128], strides = [1, 1]} : vector<16x128xf32> to vector<2x128xf32>
    %c0_33 = arith.constant 0 : index
    %c640 = arith.constant 640 : index
    %61 = vector.load %arg6[%c0_33, %c640] : memref<2x1152xf32, #tpu.memory_space<vmem>>, vector<2x128xf32>
    tpu.vector_store %arg6[%c0_33, %c640], %60 {strides = array<i32>} : memref<2x1152xf32, #tpu.memory_space<vmem>>, vector<2x128xf32>,
    %62 = vector.extract_strided_slice %49 {offsets = [10, 0], sizes = [2, 128], strides = [1, 1]} : vector<16x128xf32> to vector<2x128xf32>
    %c0_34 = arith.constant 0 : index
    %c768 = arith.constant 768 : index
    %63 = vector.load %arg6[%c0_34, %c768] : memref<2x1152xf32, #tpu.memory_space<vmem>>, vector<2x128xf32>
    tpu.vector_store %arg6[%c0_34, %c768], %62 {strides = array<i32>} : memref<2x1152xf32, #tpu.memory_space<vmem>>, vector<2x128xf32>,
    %64 = vector.extract_strided_slice %49 {offsets = [12, 0], sizes = [2, 128], strides = [1, 1]} : vector<16x128xf32> to vector<2x128xf32>
    %c0_35 = arith.constant 0 : index
    %c896 = arith.constant 896 : index
    %65 = vector.load %arg6[%c0_35, %c896] : memref<2x1152xf32, #tpu.memory_space<vmem>>, vector<2x128xf32>
    tpu.vector_store %arg6[%c0_35, %c896], %64 {strides = array<i32>} : memref<2x1152xf32, #tpu.memory_space<vmem>>, vector<2x128xf32>,
    %66 = vector.extract_strided_slice %49 {offsets = [14, 0], sizes = [2, 128], strides = [1, 1]} : vector<16x128xf32> to vector<2x128xf32>
    %c0_36 = arith.constant 0 : index
    %c1024 = arith.constant 1024 : index
    %67 = vector.load %arg6[%c0_36, %c1024] : memref<2x1152xf32, #tpu.memory_space<vmem>>, vector<2x128xf32>
    tpu.vector_store %arg6[%c0_36, %c1024], %66 {strides = array<i32>} : memref<2x1152xf32, #tpu.memory_space<vmem>>, vector<2x128xf32>,
    return
  }
}

</mosaic_0001>

<bundles_post_ra>
// kernel: rnn_forward.1
= control target key start
LH: loop header
LB: loop body
LE: loop exit
PB: predicated region body
PF: predicated region fallthrough
CT: control target
= control target key end

     0   :  { %s406_s23 = smov 124   ;;  %s407_s24 = smov 116   ;;  %vm51_vm0 = vcmask 1043456   ;;  %vm49_vm1 = vcmask 1041408   ;;  %vm53_vm2 = vcmask 1045504   ;;  %vm63_vm3 = vcmask 31744   ;;  %s744_s0 = inlined_call_operand.vmem [shape: f32[2,32], index: 0, kind: input, shape index: {}]   ;;  %s745_s3 = inlined_call_operand.vmem [shape: f32[1,128], index: 3, kind: input, shape index: {}]   ;;  %s746_s2 = inlined_call_operand.vmem [shape: f32[4,128], index: 2, kind: input, shape index: {}]   ;;  %s747_s1 = inlined_call_operand.vmem [shape: f32[128,128], index: 1, kind: input, shape index: {}]   ;;  %s748_s4 = inlined_call_operand.vmem [shape: f32[128,128], index: 4, kind: input, shape index: {}]   ;;  %s749_s5 = inlined_call_operand.vmem [shape: f32[1,128], index: 5, kind: input, shape index: {}]   ;;  %s750_s6 = inlined_call_operand.vmem [shape: f32[2,1152], index: 6, kind: output, shape index: {}]  }
   0x1   :  { %v452_v0 = vld [vmem:[%s744_s0] sm:$0x3]  ;;  %s408_s25 = smov 108   ;;  %s409_s26 = smov 120   ;;  %v465_v5 = vld [vmem:[%s747_s1 + $0x78] sm:$0xff]  ;;  %v470_v6 = vld [vmem:[%s747_s1 + $0x70] sm:$0xff] }
   0x2   :  { %v25_v1 = vrot.slane %v452_v0, 6  ;;  %v33_v2 = vrot.slane %v452_v0, 2  ;;  %v29_v3 = vrot.slane %v452_v0, 4  ;;  %s410_s27 = smov 112   ;;  %s411_s28 = smov 104   ;;  %139 = vmatpush.msra.mxu2 %v465_v5  ;;  %v477_v7 = vld [vmem:[%s747_s1 + $0x68] sm:$0xff]  ;;  %162 = vmatpush.msra.mxu3 %v465_v5 }
   0x3   :  { %s412_s0 = smov 100   ;;  %v58_v4 = vld [vmem:[%s746_s2] sm:$0xf]  ;;  %183 = vmatpush.msra.mxu0 %v465_v5  ;;  %v495_v9 = vld [vmem:[%s747_s1 + $0x58] sm:$0xff]  ;;  %v504_v10 = vld [vmem:[%s747_s1 + $0x50] sm:$0xff] }
   0x4   :  { %26 = vrot.lane.b32.xlu0 %v25_v1, %s406_s23  ;;  %34 = vrot.lane.b32.xlu1 %v33_v2, %s407_s24  ;;  %v486_v8 = vld [vmem:[%s747_s1 + $0x60] sm:$0xff]  ;;  %v513_v11 = vld [vmem:[%s747_s1 + $0x48] sm:$0xff] }
   0x5   :  { %40 = vrot.lane.b32.xlu2 %v25_v1, %s408_s25  ;;  %379 = vmatpush.msk.msra.mxu1 %vm51_vm0, %v58_v4  ;;  %v522_v12 = vld [vmem:[%s747_s1 + $0x40] sm:$0xff]  ;;  %v531_v13 = vld [vmem:[%s747_s1 + $0x38] sm:$0xff]  ;;  %v540_v14 = vld [vmem:[%s747_s1 + $0x30] sm:$0xff] }
   0x6   :  { %140 = vmatpush.msra.mxu2 %v470_v6  ;;  %163 = vmatpush.msra.mxu3 %v470_v6  ;;  %v549_v15 = vld [vmem:[%s747_s1 + $0x28] sm:$0xff]  ;;  %v100_v29 = vld [vmem:[%s747_s1 + $0x20] sm:$0xff]  ;;  %v574_v30 = vld [vmem:[%s747_s1 + $0x18] sm:$0xff] }
   0x7   :  { %116 = vmatpush.msrb.mxu1 %v465_v5  ;;  %184 = vmatpush.msra.mxu0 %v470_v6  ;;  %v98_v31 = vld [vmem:[%s747_s1 + $0x10] sm:$0xff]  ;;  %v584_v32 = vld [vmem:[%s747_s1 + $0x8] sm:$0xff]  ;;  %v591_v33 = vld [vmem:[%s747_s1] sm:$0xff] }
   0x8   :  { %141 = vmatpush.msra.mxu2 %v477_v7  ;;  %164 = vmatpush.msra.mxu3 %v477_v7  ;;  %v631_v34 = vld [vmem:[%s745_s3] ss:$0 sm:$0xff]  ;;  %v312_v43 = vld [vmem:[%s748_s4 + $0x78] sm:$0xff]  ;;  %v311_v44 = vld [vmem:[%s748_s4 + $0x70] sm:$0xff] }
   0x9   :  { %117 = vmatpush.msrb.mxu1 %v470_v6  ;;  %185 = vmatpush.msra.mxu0 %v477_v7  ;;  %v310_v45 = vld [vmem:[%s748_s4 + $0x68] sm:$0xff]  ;;  %v309_v46 = vld [vmem:[%s748_s4 + $0x60] sm:$0xff]  ;;  %v308_v47 = vld [vmem:[%s748_s4 + $0x58] sm:$0xff] }
   0xa   :  { %142 = vmatpush.msra.mxu2 %v486_v8  ;;  %165 = vmatpush.msra.mxu3 %v486_v8  ;;  %v307_v48 = vld [vmem:[%s748_s4 + $0x50] sm:$0xff]  ;;  %v306_v49 = vld [vmem:[%s748_s4 + $0x48] sm:$0xff]  ;;  %v305_v58 = vld [vmem:[%s748_s4 + $0x40] sm:$0xff] }
   0xb   :  { %118 = vmatpush.msrb.mxu1 %v477_v7  ;;  %186 = vmatpush.msra.mxu0 %v486_v8  ;;  %v304_v59 = vld [vmem:[%s748_s4 + $0x38] sm:$0xff]  ;;  %v303_v60 = vld [vmem:[%s748_s4 + $0x30] sm:$0xff]  ;;  %v302_v61 = vld [vmem:[%s748_s4 + $0x28] sm:$0xff] }
   0xc   :  { %30 = vrot.lane.b32.xlu0 %v29_v3, %s409_s26  ;;  %37 = vrot.lane.b32.xlu1 %v452_v0, %s410_s27  ;;  %v301_v62 = vld [vmem:[%s748_s4 + $0x20] sm:$0xff]  ;;  %v300_v63 = vld [vmem:[%s748_s4 + $0x18] sm:$0xff] }
   0xd   :  { %43 = vrot.lane.b32.xlu2 %v29_v3, %s411_s28  ;;  %119 = vmatpush.msrb.mxu1 %v486_v8  ;;  %v298_v1 = vld [vmem:[%s748_s4 + $0x8] sm:$0xff] }
   0xe   :  { %143 = vmatpush.msra.mxu2 %v495_v9  ;;  %166 = vmatpush.msra.mxu3 %v495_v9 }
   0xf   :  { %120 = vmatpush.msrb.mxu1 %v495_v9  ;;  %187 = vmatpush.msra.mxu0 %v495_v9 }
  0x10   :  { %144 = vmatpush.msra.mxu2 %v504_v10  ;;  %167 = vmatpush.msra.mxu3 %v504_v10 }
  0x11   :  { %121 = vmatpush.msrb.mxu1 %v504_v10  ;;  %188 = vmatpush.msra.mxu0 %v504_v10 }
  0x12   :  { %145 = vmatpush.msra.mxu2 %v513_v11  ;;  %168 = vmatpush.msra.mxu3 %v513_v11 }
  0x13   :  { %122 = vmatpush.msrb.mxu1 %v513_v11  ;;  %189 = vmatpush.msra.mxu0 %v513_v11 }
  0x14   :  { %46 = vrot.lane.b32.xlu0 %v33_v2, %s412_s0  ;;  %146 = vmatpush.msra.mxu2 %v522_v12  ;;  %v297_v2 = vld [vmem:[%s748_s4] sm:$0xff] }
  0x15   :  { %123 = vmatpush.msrb.mxu1 %v522_v12  ;;  %169 = vmatpush.msra.mxu3 %v522_v12 }
  0x16   :  { %190 = vmatpush.msra.mxu0 %v522_v12  ;;  %147 = vmatpush.msra.mxu2 %v531_v13 }
  0x17   :  { %124 = vmatpush.msrb.mxu1 %v531_v13  ;;  %170 = vmatpush.msra.mxu3 %v531_v13 }
  0x18   :  { %191 = vmatpush.msra.mxu0 %v531_v13  ;;  %148 = vmatpush.msra.mxu2 %v540_v14 }
  0x19   :  { %125 = vmatpush.msrb.mxu1 %v540_v14  ;;  %171 = vmatpush.msra.mxu3 %v540_v14 }
  0x1a   :  { %192 = vmatpush.msra.mxu0 %v540_v14  ;;  %149 = vmatpush.msra.mxu2 %v549_v15 }
  0x1b   :  { %126 = vmatpush.msrb.mxu1 %v549_v15  ;;  %172 = vmatpush.msra.mxu3 %v549_v15 }
  0x1c   :  { %193 = vmatpush.msra.mxu0 %v549_v15  ;;  %150 = vmatpush.msra.mxu2 %v100_v29 }
  0x1d   :  { %127 = vmatpush.msrb.mxu1 %v100_v29  ;;  %173 = vmatpush.msra.mxu3 %v100_v29 }
  0x1e   :  { %194 = vmatpush.msra.mxu0 %v100_v29  ;;  %151 = vmatpush.msra.mxu2 %v574_v30 }
  0x1f   :  { %128 = vmatpush.msrb.mxu1 %v574_v30  ;;  %174 = vmatpush.msra.mxu3 %v574_v30 }
  0x20   :  { %195 = vmatpush.msra.mxu0 %v574_v30  ;;  %152 = vmatpush.msra.mxu2 %v98_v31 }
  0x21   :  { %129 = vmatpush.msrb.mxu1 %v98_v31  ;;  %175 = vmatpush.msra.mxu3 %v98_v31 }
  0x22   :  { %196 = vmatpush.msra.mxu0 %v98_v31  ;;  %153 = vmatpush.msra.mxu2 %v584_v32 }
  0x23   :  { %130 = vmatpush.msrb.mxu1 %v584_v32  ;;  %176 = vmatpush.msra.mxu3 %v584_v32 }
  0x24   :  { %197 = vmatpush.msra.mxu0 %v584_v32  ;;  %154 = vmatpush.msra.mxu2 %v591_v33 }
  0x25   :  { %131 = vmatpush.msrb.mxu1 %v591_v33  ;;  %177 = vmatpush.msra.mxu3 %v591_v33 }
  0x26   :  { %198 = vmatpush.msra.mxu0 %v591_v33  ;;  %230 = vmatpush.msrb.mxu2 %v465_v5 }
  0x27   :  { %253 = vmatpush.msrb.mxu3 %v465_v5 }
  0x28   :  { %231 = vmatpush.msrb.mxu2 %v470_v6  ;;  %317 = vmatpush.msrb.mxu0 %v312_v43 }
  0x29   :  { %254 = vmatpush.msrb.mxu3 %v470_v6 }
  0x2a   :  { %232 = vmatpush.msrb.mxu2 %v477_v7  ;;  %318 = vmatpush.msrb.mxu0 %v311_v44 }
  0x2b   :  { %255 = vmatpush.msrb.mxu3 %v477_v7 }
  0x2c   :  { %233 = vmatpush.msrb.mxu2 %v486_v8  ;;  %319 = vmatpush.msrb.mxu0 %v310_v45 }
  0x2d   :  { %256 = vmatpush.msrb.mxu3 %v486_v8 }
  0x2e   :  { %234 = vmatpush.msrb.mxu2 %v495_v9  ;;  %320 = vmatpush.msrb.mxu0 %v309_v46 }
  0x2f   :  { %257 = vmatpush.msrb.mxu3 %v495_v9 }
  0x30   :  { %235 = vmatpush.msrb.mxu2 %v504_v10  ;;  %321 = vmatpush.msrb.mxu0 %v308_v47 }
  0x31   :  { %258 = vmatpush.msrb.mxu3 %v504_v10 }
  0x32   :  { %236 = vmatpush.msrb.mxu2 %v513_v11  ;;  %322 = vmatpush.msrb.mxu0 %v307_v48 }
  0x33   :  { %259 = vmatpush.msrb.mxu3 %v513_v11 }
  0x34   :  { %237 = vmatpush.msrb.mxu2 %v522_v12  ;;  %323 = vmatpush.msrb.mxu0 %v306_v49 }
  0x35   :  { %260 = vmatpush.msrb.mxu3 %v522_v12 }
  0x36   :  { %238 = vmatpush.msrb.mxu2 %v531_v13  ;;  %324 = vmatpush.msrb.mxu0 %v305_v58 }
  0x37   :  { %261 = vmatpush.msrb.mxu3 %v531_v13 }
  0x38   :  { %239 = vmatpush.msrb.mxu2 %v540_v14  ;;  %325 = vmatpush.msrb.mxu0 %v304_v59 }
  0x39   :  { %262 = vmatpush.msrb.mxu3 %v540_v14 }
  0x3a   :  { %240 = vmatpush.msrb.mxu2 %v549_v15  ;;  %326 = vmatpush.msrb.mxu0 %v303_v60 }
  0x3b   :  { %263 = vmatpush.msrb.mxu3 %v549_v15 }
  0x3c   :  { %241 = vmatpush.msrb.mxu2 %v100_v29  ;;  %327 = vmatpush.msrb.mxu0 %v302_v61 }
  0x3d   :  { %264 = vmatpush.msrb.mxu3 %v100_v29 }
  0x3e   :  { %242 = vmatpush.msrb.mxu2 %v574_v30  ;;  %328 = vmatpush.msrb.mxu0 %v301_v62 }
  0x3f   :  { %265 = vmatpush.msrb.mxu3 %v574_v30 }
  0x40   :  { %243 = vmatpush.msrb.mxu2 %v98_v31  ;;  %329 = vmatpush.msrb.mxu0 %v300_v63 }
  0x41   :  { %266 = vmatpush.msrb.mxu3 %v98_v31 }
  0x42   :  { %244 = vmatpush.msrb.mxu2 %v584_v32 }
  0x43   :  { %267 = vmatpush.msrb.mxu3 %v584_v32 }
  0x44   :  { %245 = vmatpush.msrb.mxu2 %v591_v33 }
  0x45   :  { %268 = vmatpush.msrb.mxu3 %v591_v33 }
  0x5f   :  { %v41_v18 = vpop.permute.xlu2 %40 }
  0x67   :  { %v44_v25 = vpop.permute.xlu2 %43 }
  0x76   :  { %v27_v16 = vpop.permute.xlu0 %26  ;;  %v35_v17 = vpop.permute.xlu1 %34 }
  0x77   :  { %v50_v19 = vsel %vm49_vm1, %v452_v0, %v27_v16  ;;  %v299_v0 = vld [vmem:[%s748_s4 + $0x10] sm:$0xff] }
  0x78   :  { %330 = vmatpush.msrb.mxu0 %v299_v0 }
  0x7a   :  { %331 = vmatpush.msrb.mxu0 %v298_v1 }
  0x7c   :  { %332 = vmatpush.msrb.mxu0 %v297_v2 }
  0x7e   :  { %v31_v20 = vpop.permute.xlu0 %30  ;;  %v38_v21 = vpop.permute.xlu1 %37 }
  0x7f   :  { %v52_v22 = vsel %vm51_vm0, %v50_v19, %v31_v20  ;;  %v55_v24 = vsel %vm49_vm1, %v38_v21, %v41_v18 }
  0x80   :  { %v54_v23 = vsel %vm53_vm2, %v52_v22, %v35_v17  ;;  %v56_v26 = vsel %vm51_vm0, %v55_v24, %v44_v25 }
  0x81   :  { %380 = vmatmul.msk.f32.vlgmr.msra.gmra.mxu1 %vm63_vm3, %v54_v23 }
  0x82   :  { %207 = vmatpush.msra.mxu1 %v465_v5 }
  0x84   :  { %208 = vmatpush.msra.mxu1 %v470_v6 }
  0x86   :  { %v47_v27 = vpop.permute.xlu0 %46  ;;  %209 = vmatpush.msra.mxu1 %v477_v7 }
  0x87   :  { %v57_v28 = vsel %vm53_vm2, %v56_v26, %v47_v27 }
  0x88   :  { %210 = vmatpush.msra.mxu1 %v486_v8 }
  0x89   :  { %381 = vmatmul.msk.f32.gmra.mxu1 %vm63_vm3, %v57_v28 }
  0x8a   :  { %211 = vmatpush.msra.mxu1 %v495_v9  ;;  %v413_v9 = vmov 0.0  }
  0x8b   :  { %340 = vst [vmem:[%s750_s6] sm:$0x3] %v413_v9 }
  0x8c   :  { %212 = vmatpush.msra.mxu1 %v504_v10 }
  0x8e   :  { %213 = vmatpush.msra.mxu1 %v513_v11 }
  0x90   :  { %214 = vmatpush.msra.mxu1 %v522_v12 }
  0x92   :  { %215 = vmatpush.msra.mxu1 %v531_v13  ;;  %v391_v13 = vld [vmem:[%s749_s5] ss:$0 sm:$0xff] }
  0x94   :  { %216 = vmatpush.msra.mxu1 %v540_v14 }
  0x96   :  { %217 = vmatpush.msra.mxu1 %v549_v15 }
  0x98   :  { %218 = vmatpush.msra.mxu1 %v100_v29 }
  0x9a   :  { %219 = vmatpush.msra.mxu1 %v574_v30 }
  0x9c   :  { %220 = vmatpush.msra.mxu1 %v98_v31 }
  0x9e   :  { %221 = vmatpush.msra.mxu1 %v584_v32 }
  0xa0   :  { %222 = vmatpush.msra.mxu1 %v591_v33 }
  0xfe   :  { %v90_v35 = vpop.f32.mrf.mxu1 }
  0xff   :  { %v640_v36 = vadd.f32 %v631_v34, %v90_v35 }
 0x101   :  { %392 = vtanh.f32 %v640_v36  ;;  %v114_v39 = vrot.slane %v640_v36, 2  ;;  %v137_v50 = vrot.slane %v640_v36, 4  ;;  %v160_v3 = vrot.slane %v640_v36, 6 }
 0x106   :  { %v652_v38 = vpop.f32.mrf.mxu1 }
 0x107   :  { %v393_v37 = vpop.eup %392  ;;  %v94_v10 = vadd.f32 %v631_v34, %v652_v38 }
 0x108   :  { %132 = vmatmul.f32.vlgmr.msrb.gmra.mxu1 %v393_v37 }
 0x109   :  { %v205_v20 = vrot.slane %v94_v10, 2  ;;  %v228_v24 = vrot.slane %v94_v10, 4  ;;  %v251_v32 = vrot.slane %v94_v10, 6 }
 0x185   :  { %v133_v40 = vpop.f32.mrf.mxu1 }
 0x186   :  { %v134_v41 = vadd.f32 %v133_v40, %v114_v39 }
 0x188   :  { %394 = vtanh.f32 %v134_v41  ;;  %v274_v51 = vrot.slane %v134_v41, 6 }
 0x18a   :  { %v291_v55 = vsel %vm49_vm1, %v640_v36, %v274_v51 }
 0x18e   :  { %v395_v42 = vpop.eup %394 }
 0x18f   :  { %155 = vmatmul.f32.vlgmr.msra.gmra.mxu2 %v395_v42 }
 0x212   :  { %v156_v52 = vpop.f32.mrf.mxu2 }
 0x213   :  { %v157_v53 = vadd.f32 %v156_v52, %v137_v50 }
 0x215   :  { %396 = vtanh.f32 %v157_v53  ;;  %v277_v54 = vrot.slane %v157_v53, 4 }
 0x217   :  { %v292_v56 = vsel %vm51_vm0, %v291_v55, %v277_v54 }
 0x21b   :  { %v397_v57 = vpop.eup %396 }
 0x21c   :  { %178 = vmatmul.f32.vlgmr.msra.gmra.mxu3 %v397_v57 }
 0x29f   :  { %v179_v4 = vpop.f32.mrf.mxu3 }
 0x2a0   :  { %v180_v5 = vadd.f32 %v179_v4, %v160_v3 }
 0x2a2   :  { %398 = vtanh.f32 %v180_v5  ;;  %v280_v7 = vrot.slane %v180_v5, 2 }
 0x2a4   :  { %v293_v8 = vsel %vm53_vm2, %v292_v56, %v280_v7 }
 0x2a8   :  { %v399_v6 = vpop.eup %398 }
 0x2a9   :  { %199 = vmatmul.f32.vlgmr.msra.gmra.mxu0 %v399_v6 }
 0x2b1   :  { %333 = vmatmul.f32.vlgmr.msrb.gmra.mxu0 %v293_v8 }
 0x326   :  { %v200_v11 = vpop.f32.mrf.mxu0 }
 0x327   :  { %v201_v12 = vadd.f32 %v200_v11, %v94_v10 }
 0x329   :  { %400 = vtanh.f32 %v201_v12 }
 0x32e   :  { %v334_v14 = vpop.f32.mrf.mxu0 }
 0x32f   :  { %v401_v15 = vpop.eup %400  ;;  %v335_v16 = vadd.f32 %v391_v13, %v334_v14 }
 0x330   :  { %223 = vmatmul.f32.vlgmr.msra.gmra.mxu1 %v401_v15 }
 0x331   :  { %341 = vst [vmem:[%s750_s6 + $0x2] sm:$0x3] %v335_v16 }
 0x332   :  { %343 = vst.sshfl [vmem:[#allocation1] sm:$0xff pattern:$0x73625140] %v335_v16 }
 0x339   :  { %v345_v17 = vld [vmem:[#allocation1 + $0x1] ss:$4 sm:$0xff] }
 0x33a   :  { %347 = vst [vmem:[%s750_s6 + $0x4] sm:$0x3] %v345_v17 }
 0x33b   :  { %348 = vst.sshfl [vmem:[#allocation1] sm:$0xff pattern:$0x73625140] %v335_v16 }
 0x342   :  { %v350_v18 = vld [vmem:[#allocation1 + $0x2] ss:$4 sm:$0xff] }
 0x343   :  { %352 = vst [vmem:[%s750_s6 + $0x6] sm:$0x3] %v350_v18 }
 0x344   :  { %353 = vst.sshfl [vmem:[#allocation1] sm:$0xff pattern:$0x73625140] %v335_v16 }
 0x34b   :  { %v355_v19 = vld [vmem:[#allocation1 + $0x3] ss:$4 sm:$0xff] }
 0x34c   :  { %357 = vst [vmem:[%s750_s6 + $0x8] sm:$0x3] %v355_v19 }
 0x3ad   :  { %v224_v21 = vpop.f32.mrf.mxu1 }
 0x3ae   :  { %v225_v22 = vadd.f32 %v224_v21, %v205_v20 }
 0x3b0   :  { %402 = vtanh.f32 %v225_v22  ;;  %v283_v25 = vrot.slane %v225_v22, 6 }
 0x3b2   :  { %v294_v29 = vsel %vm49_vm1, %v201_v12, %v283_v25 }
 0x3b6   :  { %v403_v23 = vpop.eup %402 }
 0x3b7   :  { %246 = vmatmul.f32.vlgmr.msrb.gmra.mxu2 %v403_v23 }
 0x43a   :  { %v247_v26 = vpop.f32.mrf.mxu2 }
 0x43b   :  { %v248_v27 = vadd.f32 %v247_v26, %v228_v24 }
 0x43d   :  { %404 = vtanh.f32 %v248_v27  ;;  %v286_v28 = vrot.slane %v248_v27, 4 }
 0x43f   :  { %v295_v30 = vsel %vm51_vm0, %v294_v29, %v286_v28 }
 0x443   :  { %v405_v31 = vpop.eup %404 }
 0x444   :  { %269 = vmatmul.f32.vlgmr.msrb.gmra.mxu3 %v405_v31 }
 0x4c7   :  { %v270_v33 = vpop.f32.mrf.mxu3 }
 0x4c8   :  { %v271_v34 = vadd.f32 %v270_v33, %v251_v32 }
 0x4ca   :  { %v289_v35 = vrot.slane %v271_v34, 2 }
 0x4cc   :  { %v296_v36 = vsel %vm53_vm2, %v295_v30, %v289_v35 }
 0x4cd   :  { %336 = vmatmul.f32.gmra.mxu0 %v296_v36 }
 0x54a   :  { %v337_v37 = vpop.f32.mrf.mxu0 }
 0x54b   :  { %v338_v38 = vadd.f32 %v391_v13, %v337_v37 }
 0x54d   :  { %358 = vst [vmem:[%s750_s6 + $0xa] sm:$0x3] %v338_v38 }
 0x54e   :  { %360 = vst.sshfl [vmem:[#allocation1] sm:$0xff pattern:$0x73625140] %v338_v38 }
 0x555   :  { %v362_v39 = vld [vmem:[#allocation1 + $0x1] ss:$4 sm:$0xff] }
 0x556   :  { %364 = vst [vmem:[%s750_s6 + $0xc] sm:$0x3] %v362_v39 }
 0x557   :  { %365 = vst.sshfl [vmem:[#allocation1] sm:$0xff pattern:$0x73625140] %v338_v38 }
 0x55e   :  { %v367_v40 = vld [vmem:[#allocation1 + $0x2] ss:$4 sm:$0xff] }
 0x55f   :  { %369 = vst [vmem:[%s750_s6 + $0xe] sm:$0x3] %v367_v40 }
 0x560   :  { %370 = vst.sshfl [vmem:[#allocation1] sm:$0xff pattern:$0x73625140] %v338_v38 }
 0x567   :  { %v372_v41 = vld [vmem:[#allocation1 + $0x3] ss:$4 sm:$0xff] }
 0x568   :  { %374 = vst [vmem:[%s750_s6 + $0x10] sm:$0x3] %v372_v41 }

</bundles_post_ra>
